<compile_context>
chip_gen: v7x
topology: tpu7x:2x2x1
jax: 0.10.0
libtpu: 0.0.40
codegen_flags: <defaults>
</compile_context>

<pallas_src>
import jax
import jax.numpy as jnp
from jax.experimental import pallas as pl
from jax.experimental.pallas import tpu as pltpu

LATENT_DIM = 32
H1, H2, H3 = 16, 32, 64
N_CONT = 5
N_CAT = 7
OUT_DIM = N_CONT + N_CAT            # 5 + 7 = 12
SPAN_INFO = ((5, 12),)              # one categorical span of width 7
TAU = 0.2                           # unused in forward: argmax is tau-invariant (tau > 0)
BN_EPS = 0.8                        # BatchNorm1d(out_feat, 0.8) -> eps=0.8
LRELU_SLOPE = 0.2
LANES = 128                         # lane-dense padded feature width

# Row layout of the packed parameter blob [P_ROWS, LANES] (f32).
# All weights are zero-padded to [128, 128] so every weight load is a full, aligned tile.
R_W1 = 0                            # rows [  0:128): w1 (valid [0:32, 0:16))
R_W2 = R_W1 + LANES                 # rows [128:256): w2 (valid [0:16, 0:32))
R_W3 = R_W2 + LANES                 # rows [256:384): w3 (valid [0:32, 0:64))
R_W4 = R_W3 + LANES                 # rows [384:512): w4 (valid [0:64, 0:12))
R_VEC = R_W4 + LANES                # 512 (8-row aligned)
R_B1, R_B2, R_G2, R_BE2, R_B3, R_G3, R_BE3, R_B4 = range(R_VEC, R_VEC + 8)
P_ROWS = R_VEC + 8                  # 520 rows (multiple of 8) -> ~266 KB, trivially VMEM-resident


def _leaky(x):
    # slope < 1  =>  LeakyReLU(x) == max(x, slope * x); single vmax on the VPU.
    return jnp.maximum(x, LRELU_SLOPE * x)


def _batchnorm_train(x, gamma, beta):
    # Training-mode BatchNorm1d with biased batch stats, single pass over the batch axis.
    # Padded lanes: x == 0 everywhere and gamma == beta == 0 -> output stays exactly 0.
    inv_b = 1.0 / x.shape[0]
    mean = jnp.sum(x, axis=0, keepdims=True) * inv_b
    ex2 = jnp.sum(x * x, axis=0, keepdims=True) * inv_b
    var = ex2 - mean * mean
    return (x - mean) * jax.lax.rsqrt(var + BN_EPS) * gamma + beta


def generator2_kernel(zg_ref, p_ref, out_ref):
    z = zg_ref[:, :LANES]            # [B,128]: z in lanes [0:32), zeros elsewhere
    gumb = zg_ref[:, LANES:]         # [B,128]: gumbel noise in lanes [5:12), zeros elsewhere

    # block(latent_dim, 16, normalize=False) -- zero-padded weight rows/cols keep pad lanes at 0
    h = jnp.dot(z, p_ref[R_W1:R_W1 + LANES, :],
                preferred_element_type=jnp.float32) + p_ref[R_B1:R_B1 + 1, :]
    h = _leaky(h)

    # block(16, 32) + BatchNorm
    h = jnp.dot(h, p_ref[R_W2:R_W2 + LANES, :],
                preferred_element_type=jnp.float32) + p_ref[R_B2:R_B2 + 1, :]
    h = _leaky(_batchnorm_train(h, p_ref[R_G2:R_G2 + 1, :], p_ref[R_BE2:R_BE2 + 1, :]))

    # block(32, 64) + BatchNorm
    h = jnp.dot(h, p_ref[R_W3:R_W3 + LANES, :],
                preferred_element_type=jnp.float32) + p_ref[R_B3:R_B3 + 1, :]
    h = _leaky(_batchnorm_train(h, p_ref[R_G3:R_G3 + 1, :], p_ref[R_BE3:R_BE3 + 1, :]))

    # final Linear(64, 12), lane-padded to 128 so `data` and the output store are lane-dense
    data = jnp.dot(h, p_ref[R_W4:R_W4 + LANES, :],
                   preferred_element_type=jnp.float32) + p_ref[R_B4:R_B4 + 1, :]  # [B, 128]

    # _apply_activate: gumbel_softmax(tau=0.2, hard=True) forward value is the one-hot of
    # argmax(logits + g); softmax/exp/tau are monotone so they are dropped entirely.
    y_all = data + gumb                                                   # [B, 128]
    col = jax.lax.broadcasted_iota(jnp.int32, data.shape, 1)
    out = jnp.where(col < N_CONT, data, 0.0)                              # continuous cols
    for (st, ed) in SPAN_INFO:
        in_span = jnp.logical_and(col >= st, col < ed)
        y = jnp.where(in_span, y_all, -jnp.inf)
        row_max = jnp.max(y, axis=-1, keepdims=True)
        # first index achieving the max (matches torch/jnp argmax tie-breaking)
        first_idx = jnp.min(jnp.where(y >= row_max, col, LANES), axis=-1, keepdims=True)
        out = out + (col == first_idx).astype(data.dtype)

    out_ref[...] = out                                                    # one full 128-lane store


def pack_params(params):
    """Pack all Generator_2 parameters into a single [520, 128] f32 slab (one DMA, done once)."""
    (w1, b1, w2, b2, g2, be2, w3, b3, g3, be3, w4, b4) = params
    blob = jnp.zeros((P_ROWS, LANES), jnp.float32)
    blob = blob.at[R_W1:R_W1 + LATENT_DIM, :H1].set(w1)
    blob = blob.at[R_W2:R_W2 + H1, :H2].set(w2)
    blob = blob.at[R_W3:R_W3 + H2, :H3].set(w3)
    blob = blob.at[R_W4:R_W4 + H3, :OUT_DIM].set(w4)
    blob = blob.at[R_B1, :H1].set(b1.reshape(-1))
    blob = blob.at[R_B2, :H2].set(b2.reshape(-1))
    blob = blob.at[R_G2, :H2].set(g2.reshape(-1))
    blob = blob.at[R_BE2, :H2].set(be2.reshape(-1))
    blob = blob.at[R_B3, :H3].set(b3.reshape(-1))
    blob = blob.at[R_G3, :H3].set(g3.reshape(-1))
    blob = blob.at[R_BE3, :H3].set(be3.reshape(-1))
    blob = blob.at[R_B4, :OUT_DIM].set(b4.reshape(-1))
    return blob


@jax.jit
def generator2_forward(z, p_blob, gumbel_noise):
    """z: [B, latent_dim], p_blob: pack_params(...), gumbel_noise: [B, 7]."""
    B = z.shape[0]
    # One lane-dense input slab: z in tile 0 (lanes [0:32)), gumbel noise in tile 1,
    # pre-aligned with the categorical lanes of `data` (lanes [5:12)).
    zg = jnp.zeros((B, 2 * LANES), jnp.float32)
    zg = zg.at[:, :LATENT_DIM].set(z)
    zg = zg.at[:, LANES + N_CONT:LANES + OUT_DIM].set(gumbel_noise)

    vmem = pl.BlockSpec(memory_space=pltpu.MemorySpace.VMEM)
    out_padded = pl.pallas_call(
        generator2_kernel,
        out_shape=jax.ShapeDtypeStruct((B, LANES), jnp.float32),
        in_specs=[vmem, vmem],
        out_specs=vmem,
    )(zg, p_blob)
    return out_padded[:, :OUT_DIM]


def _reference_forward(z, params, gumbel_noise):
    (w1, b1, w2, b2, g2, be2, w3, b3, g3, be3, w4, b4) = params

    def leaky(x):
        return jnp.where(x > 0, x, LRELU_SLOPE * x)

    def bn(x, gamma, beta):
        mean = jnp.mean(x, axis=0, keepdims=True)
        var = jnp.mean((x - mean) ** 2, axis=0, keepdims=True)
        return (x - mean) * jax.lax.rsqrt(var + BN_EPS) * gamma + beta

    h = leaky(z @ w1 + b1)
    h = leaky(bn(h @ w2 + b2, g2, be2))
    h = leaky(bn(h @ w3 + b3, g3, be3))
    data = h @ w4 + b4
    pieces = [data[:, :N_CONT]]
    for (st, ed) in SPAN_INFO:
        logits = data[:, st:ed]
        g = gumbel_noise[:, st - N_CONT:ed - N_CONT]
        idx = jnp.argmax((logits + g) / TAU, axis=-1)
        pieces.append(jax.nn.one_hot(idx, ed - st, dtype=jnp.float32))
    return jnp.concatenate(pieces, axis=1)


if __name__ == "__main__":
    key = jax.random.PRNGKey(0)
    keys = jax.random.split(key, 10)
    B = 8

    def lin_init(kw, kb, fan_in, fan_out):
        bound = 1.0 / float(fan_in) ** 0.5
        w = jax.random.uniform(kw, (fan_in, fan_out), jnp.float32, -bound, bound)
        b = jax.random.uniform(kb, (1, fan_out), jnp.float32, -bound, bound)
        return w, b

    w1, b1 = lin_init(keys[0], keys[1], LATENT_DIM, H1)
    w2, b2 = lin_init(keys[2], keys[3], H1, H2)
    w3, b3 = lin_init(keys[4], keys[5], H2, H3)
    w4, b4 = lin_init(keys[6], keys[7], H3, OUT_DIM)
    g2, be2 = jnp.ones((1, H2), jnp.float32), jnp.zeros((1, H2), jnp.float32)
    g3, be3 = jnp.ones((1, H3), jnp.float32), jnp.zeros((1, H3), jnp.float32)
    params = [w1, b1, w2, b2, g2, be2, w3, b3, g3, be3, w4, b4]
    p_blob = pack_params(params)                       # packed once, reused every call

    z = jax.random.normal(keys[8], (B, LATENT_DIM), jnp.float32)
    # gumbel noise sampled in the wrapper (glue, same stream as reference); consumed in-kernel
    gumb = jax.random.gumbel(keys[9], (B, N_CAT), jnp.float32)

    out = generator2_forward(z, p_blob, gumb)
    out = jax.block_until_ready(out)

    ref = _reference_forward(z, params, gumb)
    assert out.shape == (B, OUT_DIM)
    assert jnp.allclose(out[:, :N_CONT], ref[:, :N_CONT], atol=1e-4), "continuous part mismatch"
    assert jnp.array_equal(out[:, N_CONT:], ref[:, N_CONT:]), "one-hot part mismatch"
    assert jnp.allclose(jnp.sum(out[:, N_CONT:], axis=1), 1.0), "one-hot rows must sum to 1"

    print("KERNEL_OK")
</pallas_src>

<mosaic_0001>
module attributes {stable_mosaic.version = 11 : i64} {
  func.func @generator2_kernel(%arg0: memref<8x256xf32, #tpu.memory_space<vmem>>, %arg1: memref<520x128xf32, #tpu.memory_space<vmem>>, %arg2: memref<8x128xf32, #tpu.memory_space<vmem>>) attributes {dimension_semantics = [], scalar_prefetch = 0 : i64, scratch_operands = 0 : i64, tpu.core_type = #tpu.core_type<tc>} {
    %c0 = arith.constant 0 : index
    %c0_0 = arith.constant 0 : index
    %0 = vector.load %arg0[%c0, %c0_0] : memref<8x256xf32, #tpu.memory_space<vmem>>, vector<8x128xf32>
    %c0_1 = arith.constant 0 : index
    %c128 = arith.constant 128 : index
    %1 = vector.load %arg0[%c0_1, %c128] : memref<8x256xf32, #tpu.memory_space<vmem>>, vector<8x128xf32>
    %c0_2 = arith.constant 0 : index
    %c0_3 = arith.constant 0 : index
    %2 = vector.load %arg1[%c0_2, %c0_3] : memref<520x128xf32, #tpu.memory_space<vmem>>, vector<128x128xf32>
    %cst = arith.constant dense<0.000000e+00> : vector<8x128xf32>
    %3 = tpu.matmul %0, %2, %cst {dimension_numbers = #tpu.dot_dimension_numbers<[1], [0], [0], [1], [0, 0, 1, 1], [], []>} : vector<8x128xf32>, vector<128x128xf32>, vector<8x128xf32> -> vector<8x128xf32>
    %c512 = arith.constant 512 : index
    %c0_4 = arith.constant 0 : index
    %4 = vector.load %arg1[%c512, %c0_4] : memref<520x128xf32, #tpu.memory_space<vmem>>, vector<1x128xf32>
    %5 = vector.broadcast %4 : vector<1x128xf32> to vector<8x128xf32>
    %6 = arith.addf %3, %5 : vector<8x128xf32>
    %cst_5 = arith.constant 2.000000e-01 : f32
    %7 = vector.broadcast %cst_5 : f32 to vector<8x128xf32>
    %8 = arith.mulf %7, %6 : vector<8x128xf32>
    %9 = arith.maximumf %6, %8 : vector<8x128xf32>
    %c128_6 = arith.constant 128 : index
    %c0_7 = arith.constant 0 : index
    %10 = vector.load %arg1[%c128_6, %c0_7] : memref<520x128xf32, #tpu.memory_space<vmem>>, vector<128x128xf32>
    %cst_8 = arith.constant dense<0.000000e+00> : vector<8x128xf32>
    %11 = tpu.matmul %9, %10, %cst_8 {dimension_numbers = #tpu.dot_dimension_numbers<[1], [0], [0], [1], [0, 0, 1, 1], [], []>} : vector<8x128xf32>, vector<128x128xf32>, vector<8x128xf32> -> vector<8x128xf32>
    %c513 = arith.constant 513 : index
    %c0_9 = arith.constant 0 : index
    %12 = vector.load %arg1[%c513, %c0_9] : memref<520x128xf32, #tpu.memory_space<vmem>>, vector<1x128xf32>
    %13 = vector.broadcast %12 : vector<1x128xf32> to vector<8x128xf32>
    %14 = arith.addf %11, %13 : vector<8x128xf32>
    %c514 = arith.constant 514 : index
    %c0_10 = arith.constant 0 : index
    %15 = vector.load %arg1[%c514, %c0_10] : memref<520x128xf32, #tpu.memory_space<vmem>>, vector<1x128xf32>
    %c515 = arith.constant 515 : index
    %c0_11 = arith.constant 0 : index
    %16 = vector.load %arg1[%c515, %c0_11] : memref<520x128xf32, #tpu.memory_space<vmem>>, vector<1x128xf32>
    %cst_12 = arith.constant dense<0.000000e+00> : vector<128xf32>
    %17 = vector.multi_reduction <add>, %14, %cst_12 [0] : vector<8x128xf32> to vector<128xf32>
    %18 = vector.shape_cast %17 : vector<128xf32> to vector<1x128xf32>
    %cst_13 = arith.constant 1.250000e-01 : f32
    %19 = vector.broadcast %cst_13 : f32 to vector<1x128xf32>
    %20 = arith.mulf %18, %19 : vector<1x128xf32>
    %21 = arith.mulf %14, %14 : vector<8x128xf32>
    %cst_14 = arith.constant dense<0.000000e+00> : vector<128xf32>
    %22 = vector.multi_reduction <add>, %21, %cst_14 [0] : vector<8x128xf32> to vector<128xf32>
    %23 = vector.shape_cast %22 : vector<128xf32> to vector<1x128xf32>
    %cst_15 = arith.constant 1.250000e-01 : f32
    %24 = vector.broadcast %cst_15 : f32 to vector<1x128xf32>
    %25 = arith.mulf %23, %24 : vector<1x128xf32>
    %26 = arith.mulf %20, %20 : vector<1x128xf32>
    %27 = arith.subf %25, %26 : vector<1x128xf32>
    %28 = vector.broadcast %20 : vector<1x128xf32> to vector<8x128xf32>
    %29 = arith.subf %14, %28 : vector<8x128xf32>
    %cst_16 = arith.constant 8.000000e-01 : f32
    %30 = vector.broadcast %cst_16 : f32 to vector<1x128xf32>
    %31 = arith.addf %27, %30 : vector<1x128xf32>
    %32 = math.rsqrt %31 : vector<1x128xf32>
    %33 = vector.broadcast %32 : vector<1x128xf32> to vector<8x128xf32>
    %34 = arith.mulf %29, %33 : vector<8x128xf32>
    %35 = vector.broadcast %15 : vector<1x128xf32> to vector<8x128xf32>
    %36 = arith.mulf %34, %35 : vector<8x128xf32>
    %37 = vector.broadcast %16 : vector<1x128xf32> to vector<8x128xf32>
    %38 = arith.addf %36, %37 : vector<8x128xf32>
    %cst_17 = arith.constant 2.000000e-01 : f32
    %39 = vector.broadcast %cst_17 : f32 to vector<8x128xf32>
    %40 = arith.mulf %39, %38 : vector<8x128xf32>
    %41 = arith.maximumf %38, %40 : vector<8x128xf32>
    %c256 = arith.constant 256 : index
    %c0_18 = arith.constant 0 : index
    %42 = vector.load %arg1[%c256, %c0_18] : memref<520x128xf32, #tpu.memory_space<vmem>>, vector<128x128xf32>
    %cst_19 = arith.constant dense<0.000000e+00> : vector<8x128xf32>
    %43 = tpu.matmul %41, %42, %cst_19 {dimension_numbers = #tpu.dot_dimension_numbers<[1], [0], [0], [1], [0, 0, 1, 1], [], []>} : vector<8x128xf32>, vector<128x128xf32>, vector<8x128xf32> -> vector<8x128xf32>
    %c516 = arith.constant 516 : index
    %c0_20 = arith.constant 0 : index
    %44 = vector.load %arg1[%c516, %c0_20] : memref<520x128xf32, #tpu.memory_space<vmem>>, vector<1x128xf32>
    %45 = vector.broadcast %44 : vector<1x128xf32> to vector<8x128xf32>
    %46 = arith.addf %43, %45 : vector<8x128xf32>
    %c517 = arith.constant 517 : index
    %c0_21 = arith.constant 0 : index
    %47 = vector.load %arg1[%c517, %c0_21] : memref<520x128xf32, #tpu.memory_space<vmem>>, vector<1x128xf32>
    %c518 = arith.constant 518 : index
    %c0_22 = arith.constant 0 : index
    %48 = vector.load %arg1[%c518, %c0_22] : memref<520x128xf32, #tpu.memory_space<vmem>>, vector<1x128xf32>
    %cst_23 = arith.constant dense<0.000000e+00> : vector<128xf32>
    %49 = vector.multi_reduction <add>, %46, %cst_23 [0] : vector<8x128xf32> to vector<128xf32>
    %50 = vector.shape_cast %49 : vector<128xf32> to vector<1x128xf32>
    %cst_24 = arith.constant 1.250000e-01 : f32
    %51 = vector.broadcast %cst_24 : f32 to vector<1x128xf32>
    %52 = arith.mulf %50, %51 : vector<1x128xf32>
    %53 = arith.mulf %46, %46 : vector<8x128xf32>
    %cst_25 = arith.constant dense<0.000000e+00> : vector<128xf32>
    %54 = vector.multi_reduction <add>, %53, %cst_25 [0] : vector<8x128xf32> to vector<128xf32>
    %55 = vector.shape_cast %54 : vector<128xf32> to vector<1x128xf32>
    %cst_26 = arith.constant 1.250000e-01 : f32
    %56 = vector.broadcast %cst_26 : f32 to vector<1x128xf32>
    %57 = arith.mulf %55, %56 : vector<1x128xf32>
    %58 = arith.mulf %52, %52 : vector<1x128xf32>
    %59 = arith.subf %57, %58 : vector<1x128xf32>
    %60 = vector.broadcast %52 : vector<1x128xf32> to vector<8x128xf32>
    %61 = arith.subf %46, %60 : vector<8x128xf32>
    %cst_27 = arith.constant 8.000000e-01 : f32
    %62 = vector.broadcast %cst_27 : f32 to vector<1x128xf32>
    %63 = arith.addf %59, %62 : vector<1x128xf32>
    %64 = math.rsqrt %63 : vector<1x128xf32>
    %65 = vector.broadcast %64 : vector<1x128xf32> to vector<8x128xf32>
    %66 = arith.mulf %61, %65 : vector<8x128xf32>
    %67 = vector.broadcast %47 : vector<1x128xf32> to vector<8x128xf32>
    %68 = arith.mulf %66, %67 : vector<8x128xf32>
    %69 = vector.broadcast %48 : vector<1x128xf32> to vector<8x128xf32>
    %70 = arith.addf %68, %69 : vector<8x128xf32>
    %cst_28 = arith.constant 2.000000e-01 : f32
    %71 = vector.broadcast %cst_28 : f32 to vector<8x128xf32>
    %72 = arith.mulf %71, %70 : vector<8x128xf32>
    %73 = arith.maximumf %70, %72 : vector<8x128xf32>
    %c384 = arith.constant 384 : index
    %c0_29 = arith.constant 0 : index
    %74 = vector.load %arg1[%c384, %c0_29] : memref<520x128xf32, #tpu.memory_space<vmem>>, vector<128x128xf32>
    %cst_30 = arith.constant dense<0.000000e+00> : vector<8x128xf32>
    %75 = tpu.matmul %73, %74, %cst_30 {dimension_numbers = #tpu.dot_dimension_numbers<[1], [0], [0], [1], [0, 0, 1, 1], [], []>} : vector<8x128xf32>, vector<128x128xf32>, vector<8x128xf32> -> vector<8x128xf32>
    %c519 = arith.constant 519 : index
    %c0_31 = arith.constant 0 : index
    %76 = vector.load %arg1[%c519, %c0_31] : memref<520x128xf32, #tpu.memory_space<vmem>>, vector<1x128xf32>
    %77 = vector.broadcast %76 : vector<1x128xf32> to vector<8x128xf32>
    %78 = arith.addf %75, %77 : vector<8x128xf32>
    %79 = arith.addf %78, %1 : vector<8x128xf32>
    %80 = tpu.iota {dimensions = array<i32: 1>} : vector<8x128xi32>
    %c5_i32 = arith.constant 5 : i32
    %81 = vector.broadcast %c5_i32 : i32 to vector<8x128xi32>
    %82 = arith.cmpi slt, %80, %81 : vector<8x128xi32>
    %cst_32 = arith.constant 0.000000e+00 : f32
    %83 = vector.broadcast %cst_32 : f32 to vector<8x128xf32>
    %84 = arith.select %82, %78, %83 : vector<8x128xi1>, vector<8x128xf32>
    %c5_i32_33 = arith.constant 5 : i32
    %85 = vector.broadcast %c5_i32_33 : i32 to vector<8x128xi32>
    %86 = arith.cmpi sge, %80, %85 : vector<8x128xi32>
    %c12_i32 = arith.constant 12 : i32
    %87 = vector.broadcast %c12_i32 : i32 to vector<8x128xi32>
    %88 = arith.cmpi slt, %80, %87 : vector<8x128xi32>
    %89 = arith.andi %86, %88 : vector<8x128xi1>
    %cst_34 = arith.constant 0xFF800000 : f32
    %90 = vector.broadcast %cst_34 : f32 to vector<8x128xf32>
    %91 = arith.select %89, %79, %90 : vector<8x128xi1>, vector<8x128xf32>
    %cst_35 = arith.constant dense<0xFF800000> : vector<8xf32>
    %92 = vector.multi_reduction <maximumf>, %91, %cst_35 [1] : vector<8x128xf32> to vector<8xf32>
    %93 = vector.shape_cast %92 : vector<8xf32> to vector<8x1xf32>
    %94 = vector.broadcast %93 : vector<8x1xf32> to vector<8x128xf32>
    %95 = arith.cmpf oge, %91, %94 : vector<8x128xf32>
    %c128_i32 = arith.constant 128 : i32
    %96 = vector.broadcast %c128_i32 : i32 to vector<8x128xi32>
    %97 = arith.select %95, %80, %96 : vector<8x128xi1>, vector<8x128xi32>
    %cst_36 = arith.constant dense<2147483647> : vector<8xi32>
    %98 = vector.multi_reduction <minsi>, %97, %cst_36 [1] : vector<8x128xi32> to vector<8xi32>
    %99 = vector.shape_cast %98 : vector<8xi32> to vector<8x1xi32>
    %100 = vector.broadcast %99 : vector<8x1xi32> to vector<8x128xi32>
    %101 = arith.cmpi eq, %80, %100 : vector<8x128xi32>
    %102 = arith.extui %101 : vector<8x128xi1> to vector<8x128xi32>
    %103 = arith.sitofp %102 : vector<8x128xi32> to vector<8x128xf32>
    %104 = arith.addf %84, %103 : vector<8x128xf32>
    %c0_37 = arith.constant 0 : index
    %c0_38 = arith.constant 0 : index
    %105 = vector.load %arg2[%c0_37, %c0_38] : memref<8x128xf32, #tpu.memory_space<vmem>>, vector<8x128xf32>
    tpu.vector_store %arg2[%c0_37, %c0_38], %104 {strides = array<i32>} : memref<8x128xf32, #tpu.memory_space<vmem>>, vector<8x128xf32>,
    return
  }
}

</mosaic_0001>

<bundles_post_ra>
// kernel: generator2_forward.1
= control target key start
LH: loop header
LB: loop body
LE: loop exit
PB: predicated region body
PF: predicated region fallthrough
CT: control target
= control target key end

     0   :  { %7 = vsyncpa [#allocation3], 0  ;;  %s976_s0 = inlined_call_operand.vmem [shape: f32[8,256], index: 0, kind: input, shape index: {}]   ;;  %s977_s1 = inlined_call_operand.hbm [shape: f32[520,128], index: 1, kind: input, shape index: {}]   ;;  %s978_s2 = inlined_call_operand.hbm [shape: f32[8,128], index: 2, kind: output, shape index: {}]  }
   0x1   :  { %8 = vsyncpa [#allocation4], 0  ;;  %s883_s9 = smov [#allocation2]   ;;  %s835_s13 = scalar_lea.hbm %s977_s1, 8320 }
   0x2   :  { %s16_s10 = sshll.u32 %s883_s9, 4  ;;  %p836_p0 = scmp.ne.s32.totalorder %s977_s1, %s835_s13  ;;  %s17_s10 = int_to_ptr.vmem [resolvable:$true] %s16_s10 }
   0x3   :  { %p839_p1 = scmp.lt.u32.totalorder %s835_s13, %s977_s1 }
   0x5   :  { %p841_p2 = pnand %p839_p1, %p836_p0 }
   0x7   :  { %844 = shalt.err (!%p841_p2)
}
   0x8   :  { %s845_s18 = scalar_lea.vmem %s17_s10, 8320  ;;  %p850_p4 = scmp.lt.s32.totalorder %s17_s10, %s17_s10 }
   0x9   :  { %p846_p3 = scmp.ne.s32.totalorder %s17_s10, %s845_s18  ;;  %p851_p5 = scmp.lt.s32.totalorder %s845_s18, %s845_s18 }
   0xb   :  { %p852_p6 = por %p851_p5, %p850_p4 }
   0xd   :  { %p853_p7 = pnand %p852_p6, %p846_p3 }
   0xf   :  { %856 = shalt.err (!%p853_p7)
}
  0x10   :  { %s884_s19 = smov 128   ;;  %s885_s20 = smov 8  }
  0x11   :  { %22 = dma.hbm_to_vmem [thread:$0]  %s977_s1, 8320, %s17_s10, [#allocation3], %s884_s19, %s884_s19, %s885_s20  }
  0x12   :  { %879 = dma.done.wait [#allocation3], 8320  }
  0x13   :  { %880 = vsyncadd [#allocation3], 4294958976  ;;  %v886_v0 = vmov 0.0|0.0   ;;  %vm887_vm0 = vmmov 0   ;;  %v888_v1 = vmov 0.0   ;;  %v28_v2 = vld [vmem:[#allocation2] sm:$0xff] }
  0x14   :  { %728 = vmatprep.subr.bf16.mxu0 %v886_v0  ;;  %620 = vmatprep.mubr.msk.f32.mxu0 %vm887_vm0, %v888_v1  ;;  %v29_v3 = vld [vmem:[#allocation2 + $0x8] sm:$0xff]  ;;  %v30_v4 = vld [vmem:[#allocation2 + $0x10] sm:$0xff]  ;;  %v31_v6 = vld [vmem:[#allocation2 + $0x18] sm:$0xff] }
  0x15   :  { %752 = vmatprep.subr.bf16.mxu1 %v886_v0  ;;  %655 = vmatprep.mubr.msk.f32.mxu1 %vm887_vm0, %v888_v1  ;;  %v729_v5 = vpack.c.bf16 %v29_v3, %v28_v2  ;;  %v732_v7 = vpack.c.bf16 %v31_v6, %v30_v4  ;;  %v32_v8 = vld [vmem:[#allocation2 + $0x20] sm:$0xff]  ;;  %v33_v9 = vld [vmem:[#allocation2 + $0x28] sm:$0xff]  ;;  %v123_v12 = vld [vmem:[#allocation2 + $0x90] sm:$0xff] }
  0x16   :  { %v121_v10 = vld [vmem:[#allocation2 + $0x80] sm:$0xff]  ;;  %v122_v11 = vld [vmem:[#allocation2 + $0x88] sm:$0xff]  ;;  %v124_v13 = vld [vmem:[#allocation2 + $0x98] sm:$0xff]  ;;  %v735_v14 = vpack.c.bf16 %v33_v9, %v32_v8 }
  0x17   :  { %730 = vmatpush3.bf16.msra.mxu0 %v729_v5  ;;  %v753_v15 = vpack.c.bf16 %v122_v11, %v121_v10  ;;  %v34_v16 = vld [vmem:[#allocation2 + $0x30] sm:$0xff]  ;;  %v35_v17 = vld [vmem:[#allocation2 + $0x38] sm:$0xff]  ;;  %v756_v18 = vpack.c.bf16 %v124_v13, %v123_v12  ;;  %v125_v19 = vld [vmem:[#allocation2 + $0xa0] sm:$0xff] }
  0x18   :  { %731 = vmatprep.subr.bf16.mxu0 %v886_v0  ;;  %v126_v20 = vld [vmem:[#allocation2 + $0xa8] sm:$0xff]  ;;  %v738_v21 = vpack.c.bf16 %v35_v17, %v34_v16  ;;  %v36_v22 = vld [vmem:[#allocation2 + $0x40] sm:$0xff]  ;;  %v127_v25 = vld [vmem:[#allocation2 + $0xb0] sm:$0xff] }
  0x19   :  { %754 = vmatpush3.bf16.msra.mxu1 %v753_v15  ;;  %v37_v23 = vld [vmem:[#allocation2 + $0x48] sm:$0xff]  ;;  %v759_v24 = vpack.c.bf16 %v126_v20, %v125_v19  ;;  %v128_v26 = vld [vmem:[#allocation2 + $0xb8] sm:$0xff]  ;;  %v38_v28 = vld [vmem:[#allocation2 + $0x50] sm:$0xff] }
  0x1a   :  { %755 = vmatprep.subr.bf16.mxu1 %v886_v0  ;;  %v741_v27 = vpack.c.bf16 %v37_v23, %v36_v22  ;;  %v39_v29 = vld [vmem:[#allocation2 + $0x58] sm:$0xff]  ;;  %v762_v30 = vpack.c.bf16 %v128_v26, %v127_v25  ;;  %v129_v31 = vld [vmem:[#allocation2 + $0xc0] sm:$0xff]  ;;  %v130_v32 = vld [vmem:[#allocation2 + $0xc8] sm:$0xff] }
  0x1b   :  { %733 = vmatpush3.bf16.msra.mxu0 %v732_v7  ;;  %v744_v33 = vpack.c.bf16 %v39_v29, %v38_v28  ;;  %v40_v34 = vld [vmem:[#allocation2 + $0x60] sm:$0xff]  ;;  %v41_v35 = vld [vmem:[#allocation2 + $0x68] sm:$0xff]  ;;  %v765_v36 = vpack.c.bf16 %v130_v32, %v129_v31  ;;  %v131_v37 = vld [vmem:[#allocation2 + $0xd0] sm:$0xff] }
  0x1c   :  { %734 = vmatprep.subr.bf16.mxu0 %v886_v0  ;;  %v132_v38 = vld [vmem:[#allocation2 + $0xd8] sm:$0xff]  ;;  %v747_v39 = vpack.c.bf16 %v41_v35, %v40_v34  ;;  %v42_v40 = vld [vmem:[#allocation2 + $0x70] sm:$0xff]  ;;  %v26_v44 = vld [vmem:[%s976_s0] sm:$0xff] }
  0x1d   :  { %757 = vmatpush3.bf16.msra.mxu1 %v756_v18  ;;  %v43_v41 = vld [vmem:[#allocation2 + $0x78] sm:$0xff]  ;;  %v768_v42 = vpack.c.bf16 %v132_v38, %v131_v37  ;;  %v133_v45 = vld [vmem:[#allocation2 + $0xe0] sm:$0xff]  ;;  %v134_v46 = vld [vmem:[#allocation2 + $0xe8] sm:$0xff] }
  0x1e   :  { %758 = vmatprep.subr.bf16.mxu1 %v886_v0  ;;  %v750_v43 = vpack.c.bf16 %v43_v41, %v42_v40  ;;  %v771_v47 = vpack.c.bf16 %v134_v46, %v133_v45  ;;  %v135_v48 = vld [vmem:[#allocation2 + $0xf0] sm:$0xff]  ;;  %v136_v49 = vld [vmem:[#allocation2 + $0xf8] sm:$0xff]  ;;  %v511_v51 = vld [vmem:[#allocation2 + $0x200] ss:$0 sm:$0xff] }
  0x1f   :  { %736 = vmatpush3.bf16.msra.mxu0 %v735_v14  ;;  %v774_v50 = vpack.c.bf16 %v136_v49, %v135_v48  ;;  %v247_v57 = vld [vmem:[#allocation2 + $0x100] sm:$0xff]  ;;  %v248_v58 = vld [vmem:[#allocation2 + $0x108] sm:$0xff]  ;;  %v249_v60 = vld [vmem:[#allocation2 + $0x110] sm:$0xff] }
  0x20   :  { %737 = vmatprep.subr.bf16.mxu0 %v886_v0  ;;  %v777_v59 = vpack.c.bf16 %v248_v58, %v247_v57  ;;  %v250_v61 = vld [vmem:[#allocation2 + $0x118] sm:$0xff]  ;;  %v251_v63 = vld [vmem:[#allocation2 + $0x120] sm:$0xff]  ;;  %v252_v2 = vld [vmem:[#allocation2 + $0x128] sm:$0xff] }
  0x21   :  { %760 = vmatpush3.bf16.msra.mxu1 %v759_v24  ;;  %v780_v62 = vpack.c.bf16 %v250_v61, %v249_v60  ;;  %v783_v3 = vpack.c.bf16 %v252_v2, %v251_v63  ;;  %v253_v4 = vld [vmem:[#allocation2 + $0x130] sm:$0xff]  ;;  %v254_v5 = vld [vmem:[#allocation2 + $0x138] sm:$0xff]  ;;  %v255_v7 = vld [vmem:[#allocation2 + $0x140] sm:$0xff] }
  0x22   :  { %761 = vmatprep.subr.bf16.mxu1 %v886_v0  ;;  %v786_v6 = vpack.c.bf16 %v254_v5, %v253_v4  ;;  %v256_v8 = vld [vmem:[#allocation2 + $0x148] sm:$0xff]  ;;  %v257_v10 = vld [vmem:[#allocation2 + $0x150] sm:$0xff]  ;;  %v258_v11 = vld [vmem:[#allocation2 + $0x158] sm:$0xff] }
  0x23   :  { %739 = vmatpush3.bf16.msra.mxu0 %v738_v21  ;;  %v789_v9 = vpack.c.bf16 %v256_v8, %v255_v7  ;;  %v792_v12 = vpack.c.bf16 %v258_v11, %v257_v10  ;;  %v259_v13 = vld [vmem:[#allocation2 + $0x160] sm:$0xff]  ;;  %v260_v14 = vld [vmem:[#allocation2 + $0x168] sm:$0xff]  ;;  %v261_v15 = vld [vmem:[#allocation2 + $0x170] sm:$0xff] }
  0x24   :  { %740 = vmatprep.subr.bf16.mxu0 %v886_v0  ;;  %v795_v16 = vpack.c.bf16 %v260_v14, %v259_v13  ;;  %v262_v17 = vld [vmem:[#allocation2 + $0x178] sm:$0xff]  ;;  %v512_v19 = vld [vmem:[#allocation2 + $0x201] ss:$0 sm:$0xff]  ;;  %v514_v45 = vld [vmem:[#allocation2 + $0x203] ss:$0 sm:$0xff] }
  0x25   :  { %763 = vmatpush3.bf16.msra.mxu1 %v762_v30  ;;  %v798_v18 = vpack.c.bf16 %v262_v17, %v261_v15  ;;  %v378_v57 = vld [vmem:[#allocation2 + $0x1a8] sm:$0xff]  ;;  %v380_v60 = vld [vmem:[#allocation2 + $0x1b8] sm:$0xff]  ;;  %v387_v8 = vld [vmem:[#allocation2 + $0x1f0] sm:$0xff] }
  0x26   :  { %764 = vmatprep.subr.bf16.mxu1 %v886_v0  ;;  %v382_v63 = vld [vmem:[#allocation2 + $0x1c8] sm:$0xff]  ;;  %v384_v4 = vld [vmem:[#allocation2 + $0x1d8] sm:$0xff] }
  0x27   :  { %742 = vmatpush3.bf16.msra.mxu0 %v741_v27  ;;  %v386_v7 = vld [vmem:[#allocation2 + $0x1e8] sm:$0xff]  ;;  %v388_v10 = vld [vmem:[#allocation2 + $0x1f8] sm:$0xff] }
  0x28   :  { %743 = vmatprep.subr.bf16.mxu0 %v886_v0  ;;  %v822_v11 = vpack.c.bf16 %v388_v10, %v387_v8 }
  0x29   :  { %766 = vmatpush3.bf16.msra.mxu1 %v765_v36 }
  0x2a   :  { %767 = vmatprep.subr.bf16.mxu1 %v886_v0 }
  0x2b   :  { %745 = vmatpush3.bf16.msra.mxu0 %v744_v33 }
  0x2c   :  { %746 = vmatprep.subr.bf16.mxu0 %v886_v0 }
  0x2d   :  { %769 = vmatpush3.bf16.msra.mxu1 %v768_v42 }
  0x2e   :  { %770 = vmatprep.subr.bf16.mxu1 %v886_v0 }
  0x2f   :  { %748 = vmatpush3.bf16.msra.mxu0 %v747_v39 }
  0x30   :  { %749 = vmatprep.subr.bf16.mxu0 %v886_v0 }
  0x31   :  { %772 = vmatpush3.bf16.msra.mxu1 %v771_v47 }
  0x32   :  { %773 = vmatprep.subr.bf16.mxu1 %v886_v0 }
  0x33   :  { %751 = vmatpush3.bf16.msra.mxu0 %v750_v43  ;;  %v513_v43 = vld [vmem:[#allocation2 + $0x202] ss:$0 sm:$0xff] }
  0x34   :  { %776 = vmatprep.subr.bf16.mxu0 %v886_v0 }
  0x35   :  { %775 = vmatpush3.bf16.msra.mxu1 %v774_v50  ;;  %v373_v50 = vld [vmem:[#allocation2 + $0x180] sm:$0xff] }
  0x36   :  { %621 = vmatmul.mubr.f32.vlgmr.msra.gmra.mrb[0].mxu0 %v26_v44  ;;  %800 = vmatprep.subr.bf16.mxu1 %v886_v0 }
  0x37   :  { %690 = vmatprep.mubr.msk.f32.mxu0 %vm887_vm0, %v888_v1  ;;  %778 = vmatpush3.bf16.msra.mxu0 %v777_v59  ;;  %v379_v59 = vld [vmem:[#allocation2 + $0x1b0] sm:$0xff] }
  0x38   :  { %779 = vmatprep.subr.bf16.mxu0 %v886_v0  ;;  %v810_v61 = vpack.c.bf16 %v380_v60, %v379_v59 }
  0x3b   :  { %781 = vmatpush3.bf16.msra.mxu0 %v780_v62  ;;  %v381_v62 = vld [vmem:[#allocation2 + $0x1c0] sm:$0xff] }
  0x3c   :  { %782 = vmatprep.subr.bf16.mxu0 %v886_v0  ;;  %v813_v2 = vpack.c.bf16 %v382_v63, %v381_v62 }
  0x3f   :  { %784 = vmatpush3.bf16.msra.mxu0 %v783_v3  ;;  %v383_v3 = vld [vmem:[#allocation2 + $0x1d0] sm:$0xff] }
  0x40   :  { %785 = vmatprep.subr.bf16.mxu0 %v886_v0  ;;  %v816_v5 = vpack.c.bf16 %v384_v4, %v383_v3 }
  0x43   :  { %787 = vmatpush3.bf16.msra.mxu0 %v786_v6  ;;  %v385_v6 = vld [vmem:[#allocation2 + $0x1e0] sm:$0xff] }
  0x44   :  { %788 = vmatprep.subr.bf16.mxu0 %v886_v0 }
  0x47   :  { %790 = vmatpush3.bf16.msra.mxu0 %v789_v9  ;;  %v819_v9 = vpack.c.bf16 %v386_v7, %v385_v6 }
  0x48   :  { %791 = vmatprep.subr.bf16.mxu0 %v886_v0 }
  0x4b   :  { %793 = vmatpush3.bf16.msra.mxu0 %v792_v12  ;;  %v515_v12 = vld [vmem:[#allocation2 + $0x204] ss:$0 sm:$0xff] }
  0x4c   :  { %794 = vmatprep.subr.bf16.mxu0 %v886_v0 }
  0x4f   :  { %796 = vmatpush3.bf16.msra.mxu0 %v795_v16 }
  0x50   :  { %797 = vmatprep.subr.bf16.mxu0 %v886_v0 }
  0x53   :  { %799 = vmatpush3.bf16.msra.mxu0 %v798_v18 }
 0x109   :  { %v115_v52 = vpop.f32.mrb[0].mxu0 }
 0x10a   :  { %v116_v53 = vadd.f32 %v511_v51, %v115_v52  ;;  %v622_v54 = vpop.f32.mrb[1].mxu0  ;;  %v374_v51 = vld [vmem:[#allocation2 + $0x188] sm:$0xff] }
 0x10b   :  { %v801_v52 = vpack.c.bf16 %v374_v51, %v373_v50  ;;  %v376_v54 = vld [vmem:[#allocation2 + $0x198] sm:$0xff] }
 0x10c   :  { %v119_v55 = vmul.f32 0.2, %v116_v53 }
 0x10e   :  { %v120_v56 = vmax.f32 %v116_v53, %v119_v55  ;;  %v375_v53 = vld [vmem:[#allocation2 + $0x190] sm:$0xff] }
 0x10f   :  { %v804_v55 = vpack.c.bf16 %v376_v54, %v375_v53 }
 0x110   :  { %656 = vmatmul.mubr.f32.vlgmr.msra.gmra.mrb[0].mxu1 %v120_v56  ;;  %v377_v56 = vld [vmem:[#allocation2 + $0x1a0] sm:$0xff] }
 0x111   :  { %725 = vmatprep.mubr.msk.f32.mxu1 %vm887_vm0, %v888_v1  ;;  %802 = vmatpush3.bf16.msra.mxu1 %v801_v52  ;;  %v807_v58 = vpack.c.bf16 %v378_v57, %v377_v56 }
 0x112   :  { %803 = vmatprep.subr.bf16.mxu1 %v886_v0 }
 0x115   :  { %805 = vmatpush3.bf16.msra.mxu1 %v804_v55 }
 0x116   :  { %806 = vmatprep.subr.bf16.mxu1 %v886_v0 }
 0x119   :  { %808 = vmatpush3.bf16.msra.mxu1 %v807_v58 }
 0x11a   :  { %809 = vmatprep.subr.bf16.mxu1 %v886_v0 }
 0x11d   :  { %811 = vmatpush3.bf16.msra.mxu1 %v810_v61 }
 0x11e   :  { %812 = vmatprep.subr.bf16.mxu1 %v886_v0 }
 0x121   :  { %814 = vmatpush3.bf16.msra.mxu1 %v813_v2 }
 0x122   :  { %815 = vmatprep.subr.bf16.mxu1 %v886_v0 }
 0x125   :  { %817 = vmatpush3.bf16.msra.mxu1 %v816_v5 }
 0x126   :  { %818 = vmatprep.subr.bf16.mxu1 %v886_v0 }
 0x129   :  { %820 = vmatpush3.bf16.msra.mxu1 %v819_v9 }
 0x12a   :  { %821 = vmatprep.subr.bf16.mxu1 %v886_v0 }
 0x12d   :  { %823 = vmatpush3.bf16.msra.mxu1 %v822_v11 }
 0x1e3   :  { %v208_v20 = vpop.f32.mrb[0].mxu1 }
 0x1e4   :  { %v209_v21 = vadd.f32 %v512_v19, %v208_v20  ;;  %v657_v22 = vpop.f32.mrb[1].mxu1 }
 0x1e6   :  { %v214_v23 = vrot.slane %v209_v21, 4  ;;  %v221_v24 = vmul.f32 %v209_v21, %v209_v21 }
 0x1e8   :  { %v215_v25 = vadd.f32 %v214_v23, %v209_v21  ;;  %v222_v26 = vrot.slane %v221_v24, 4 }
 0x1ea   :  { %v216_v27 = vrot.slane %v215_v25, 2  ;;  %v223_v28 = vadd.f32 %v222_v26, %v221_v24 }
 0x1ec   :  { %v217_v29 = vadd.f32 %v216_v27, %v215_v25  ;;  %v224_v30 = vrot.slane %v223_v28, 2 }
 0x1ee   :  { %v218_v31 = vrot.slane %v217_v29, 1  ;;  %v225_v32 = vadd.f32 %v224_v30, %v223_v28 }
 0x1f0   :  { %v219_v33 = vadd.f32 %v218_v31, %v217_v29  ;;  %v226_v34 = vrot.slane %v225_v32, 1 }
 0x1f2   :  { %v220_v35 = vmul.f32 0.125, %v219_v33  ;;  %v227_v36 = vadd.f32 %v226_v34, %v225_v32 }
 0x1f4   :  { %v228_v37 = vmul.f32 0.125, %v227_v36  ;;  %v229_v38 = vmul.f32 %v220_v35, %v220_v35  ;;  %v231_v41 = vsub.f32 %v209_v21, %v220_v35  ;;  %v516_v35 = vld [vmem:[#allocation2 + $0x205] ss:$0 sm:$0xff] }
 0x1f6   :  { %v230_v39 = vsub.f32 %v228_v37, %v229_v38  ;;  %v517_v37 = vld [vmem:[#allocation2 + $0x206] ss:$0 sm:$0xff] }
 0x1f8   :  { %v232_v40 = vadd.f32 0.8, %v230_v39 }
 0x1fa   :  { %831 = vrsqrt.f32 %v232_v40 }
 0x204   :  { %v832_v42 = vpop.eup %831 }
 0x205   :  { %v234_v44 = vmul.f32 %v832_v42, %v231_v41  ;;  %v465_v42 = vlaneseq }
 0x207   :  { %v239_v46 = vmul.f32 %v513_v43, %v234_v44  ;;  %v466_v43 = vand.u32 127, %v465_v42  ;;  %v518_v44 = vld [vmem:[#allocation2 + $0x207] ss:$0 sm:$0xff] }
 0x209   :  { %v244_v47 = vadd.f32 %v514_v45, %v239_v46  ;;  %vm469_vm1 = vcmp.ge.s32.totalorder %v466_v43, 5  ;;  %vm470_vm2 = vcmp.lt.s32.totalorder %v466_v43, 12  ;;  %v27_v46 = vld [vmem:[%s976_s0 + $0x8] sm:$0xff]  ;;  %vm467_vm6 = vcmp.lt.s32.totalorder %v466_v43, 5  ;;  %s889_s0 = smov [#allocation5]  }
 0x20a   :  { %vm471_vm3 = vmand %vm469_vm1, %vm470_vm2  ;;  %s502_s26 = sshll.u32 %s889_s0, 4  ;;  %s503_s26 = int_to_ptr.vmem [resolvable:$true] %s502_s26 }
 0x20b   :  { %v245_v48 = vmul.f32 0.2, %v244_v47  ;;  %s857_s27 = scalar_lea.vmem %s503_s26, 128  ;;  %p862_p9 = scmp.lt.s32.totalorder %s503_s26, %s503_s26 }
 0x20c   :  { %p858_p8 = scmp.ne.s32.totalorder %s503_s26, %s857_s27  ;;  %p863_p10 = scmp.lt.s32.totalorder %s857_s27, %s857_s27 }
 0x20d   :  { %v246_v49 = vmax.f32 %v244_v47, %v245_v48 }
 0x20e   :  { %p864_p11 = por %p863_p10, %p862_p9 }
 0x20f   :  { %691 = vmatmul.mubr.f32.vlgmr.msra.gmra.mrb[2].mxu0 %v246_v49 }
 0x210   :  { %p865_p12 = pnand %p864_p11, %p858_p8 }
 0x2e2   :  { %v334_v13 = vpop.f32.mrb[2].mxu0 }
 0x2e3   :  { %v335_v14 = vadd.f32 %v515_v12, %v334_v13  ;;  %v692_v15 = vpop.f32.mrb[3].mxu0 }
 0x2e5   :  { %v340_v16 = vrot.slane %v335_v14, 4  ;;  %v347_v17 = vmul.f32 %v335_v14, %v335_v14 }
 0x2e7   :  { %v341_v18 = vadd.f32 %v340_v16, %v335_v14  ;;  %v348_v19 = vrot.slane %v347_v17, 4 }
 0x2e9   :  { %v342_v20 = vrot.slane %v341_v18, 2  ;;  %v349_v21 = vadd.f32 %v348_v19, %v347_v17 }
 0x2eb   :  { %v343_v22 = vadd.f32 %v342_v20, %v341_v18  ;;  %v350_v23 = vrot.slane %v349_v21, 2 }
 0x2ed   :  { %v344_v24 = vrot.slane %v343_v22, 1  ;;  %v351_v25 = vadd.f32 %v350_v23, %v349_v21 }
 0x2ef   :  { %v345_v26 = vadd.f32 %v344_v24, %v343_v22  ;;  %v352_v27 = vrot.slane %v351_v25, 1 }
 0x2f1   :  { %v346_v28 = vmul.f32 0.125, %v345_v26  ;;  %v353_v29 = vadd.f32 %v352_v27, %v351_v25 }
 0x2f3   :  { %v354_v0 = vmul.f32 0.125, %v353_v29  ;;  %v355_v30 = vmul.f32 %v346_v28, %v346_v28  ;;  %v357_v33 = vsub.f32 %v335_v14, %v346_v28 }
 0x2f5   :  { %v356_v31 = vsub.f32 %v354_v0, %v355_v30 }
 0x2f7   :  { %v358_v32 = vadd.f32 0.8, %v356_v31 }
 0x2f9   :  { %833 = vrsqrt.f32 %v358_v32 }
 0x303   :  { %v834_v34 = vpop.eup %833 }
 0x304   :  { %v360_v36 = vmul.f32 %v834_v34, %v357_v33 }
 0x306   :  { %v365_v38 = vmul.f32 %v516_v35, %v360_v36 }
 0x308   :  { %v370_v39 = vadd.f32 %v517_v37, %v365_v38 }
 0x30a   :  { %v371_v40 = vmul.f32 0.2, %v370_v39 }
 0x30c   :  { %v372_v41 = vmax.f32 %v370_v39, %v371_v40 }
 0x30e   :  { %726 = vmatmul.mubr.f32.vlgmr.msra.gmra.mrb[2].mxu1 %v372_v41 }
 0x3e1   :  { %v460_v45 = vpop.f32.mrb[2].mxu1 }
 0x3e2   :  { %v461_v47 = vadd.f32 %v518_v44, %v460_v45  ;;  %v727_v48 = vpop.f32.mrb[3].mxu1 }
 0x3e4   :  { %v464_v49 = vadd.f32 %v461_v47, %v27_v46  ;;  %v468_v2 = vsel %vm467_vm6, %v461_v47, 0.0 }
 0x3e6   :  { %v472_v50 = vsel %vm471_vm3, %v464_v49, -inf }
 0x3e7   :  { %473 = vmax.xlane.f32.xlu0 %v472_v50 }
 0x474   :  { %v474_v51 = vpop.xlane.xlu0 %473 }
 0x475   :  { %vm475_vm4 = vcmp.ge.f32.partialorder %v472_v50, %v474_v51 }
 0x476   :  { %v476_v52 = vsel %vm475_vm4, %v466_v43, 128 }
 0x477   :  { %v478_v53 = vshra.s32 %v476_v52, 16  ;;  %v477_v55 = vand.u32 65535, %v476_v52 }
 0x479   :  { %v480_v54 = vcvt.s32.f32 %v478_v53  ;;  %v479_v57 = vcvt.s32.f32 %v477_v55 }
 0x47b   :  { %481 = vmin.xlane.f32.xlu0 %v480_v54 }
 0x508   :  { %v482_v56 = vpop.xlane.xlu0 %481 }
 0x509   :  { %vm483_vm5 = vcmp.eq.f32.partialorder %v480_v54, %v482_v56  ;;  %v488_v59 = vcvt.f32.s32 %v482_v56 }
 0x50a   :  { %v484_v58 = vsel %vm483_vm5, %v479_v57, inf }
 0x50b   :  { %485 = vmin.xlane.f32.xlu1 %v484_v58  ;;  %v489_v61 = vshll.u32 %v488_v59, 16 }
 0x598   :  { %v486_v60 = vpop.xlane.xlu1 %485 }
 0x599   :  { %v487_v62 = vcvt.f32.s32 %v486_v60 }
 0x59b   :  { %v490_v63 = vadd.s32 %v489_v61, %v487_v62 }
 0x59d   :  { %vm491_vm7 = vcmp.eq.s32.totalorder %v466_v43, %v490_v63 }
 0x59e   :  { %v519_v3 = vsel %vm491_vm7, 1.0, %v888_v1 }
 0x59f   :  { %v494_v4 = vadd.f32 %v519_v3, %v468_v2 }
 0x5a1   :  { %495 = vst [vmem:[#allocation5] sm:$0xff] %v494_v4 }
 0x5a2   :  { %868 = shalt.err (!%p865_p12)
}
 0x5a3   :  { %s869_s30 = scalar_lea.hbm %s978_s2, 128 }
 0x5a4   :  { %p870_p13 = scmp.ne.s32.totalorder %s978_s2, %s869_s30  ;;  %p873_p0 = scmp.lt.u32.totalorder %s869_s30, %s978_s2 }
 0x5a6   :  { %p875_p1 = pnand %p873_p0, %p870_p13 }
 0x5a8   :  { %878 = shalt.err (!%p875_p1)
}
 0x5a9   :  { %505 = dma.vmem_to_hbm [thread:$0]  %s503_s26, 128, %s978_s2, [#allocation4]  }
 0x5aa   :  { %881 = dma.done.wait [#allocation4], 128  }
 0x5ab   :  { %882 = vsyncadd [#allocation4], 4294967168 }
 0x5ac   :  { %509 = vsyncpa [#allocation3], 1 }
 0x5ad   :  { %510 = vsyncpa [#allocation4], 1 }

</bundles_post_ra>
